<compile_context>
chip_gen: v7x
topology: tpu7x:2x2x1
jax: 0.10.0
libtpu: 0.0.40
codegen_flags: <defaults>
</compile_context>

<pallas_src>
import jax
import jax.numpy as jnp
from jax.experimental import pallas as pl
from jax.experimental.pallas import tpu as pltpu


_INV_SQRT2 = 0.7071067811865476


def _cdiv(a, b):
    return -(-a // b)


def _recip(d):
    """EUP approximate reciprocal + one Newton step (~full f32 accuracy)."""
    r = pl.reciprocal(d, approx=True)
    return r * (2.0 - d * r)


def _gelu_exact(f):
    """Exact (erf) GELU without compare/select:
         gelu(f) = 0.5*f*(1 + erf(f/sqrt2)) = 0.5*(f + |f| * erf(|f|/sqrt2))
       erf on [0, inf) via Abramowitz & Stegun 7.1.26 (|err| < 1.5e-7)."""
    af = jnp.abs(f)
    az = af * _INV_SQRT2
    t = _recip(1.0 + 0.3275911 * az)
    poly = t * (0.254829592 + t * (-0.284496736 + t * (1.421413741
               + t * (-1.453152027 + t * 1.061405429))))
    e = 1.0 - poly * jnp.exp(-(az * az))          # erf(|f|/sqrt2) >= 0
    return 0.5 * (f + af * e)


def _make_kernel(C, G):
    """C = F_int channels, G = batch images packed on the sublane axis."""

    def kernel(g_ref, x_ref, p_ref, o_ref):
        # g_ref, x_ref, o_ref : (nb, G*C, T)   T = lane-dense HW tile
        # p_ref               : (C+1, 1)       rows 0..C-1 = BN-folded conv w,
        #                                      row  C      = folded bias/BN shift
        x = x_ref[...]
        xf = x.astype(jnp.float32)
        a = _gelu_exact(g_ref[...].astype(jnp.float32) + xf)    # (nb, G*C, T) f32
        w = p_ref[0:C, :]                                       # (C, 1)
        shift = p_ref[C:C + 1, :]                               # (1, 1)
        for gi in range(G):                                     # unrolled, G <= 8
            lo = gi * C
            pre = jnp.sum(a[:, lo:lo + C, :] * w, axis=1, keepdims=True) + shift
            pre = jnp.maximum(pre, -60.0)                       # exp-overflow guard
            psi = _recip(1.0 + jnp.exp(-pre))                   # sigmoid, (nb,1,T)
            o_ref[:, lo:lo + C, :] = (xf[:, lo:lo + C, :] * psi).astype(o_ref.dtype)

    return kernel


def spattention_forward(g_nchw, x_nchw, params, *, eps=1e-5):
    """g, x: (N, F_int, H, W) in PyTorch NCHW layout. Returns x * psi (x's dtype)."""
    assert g_nchw.shape == x_nchw.shape
    N, C, H, W = x_nchw.shape
    HW = H * W
    dtype = x_nchw.dtype

    # --- pack batch images onto the sublane axis for small channel counts so
    #     each (8,128) vreg is fully occupied (2x VPU / VMEM efficiency at C=4).
    G = 1
    if C in (1, 2, 4):
        G = 8 // C
        while G > 1 and N % G != 0:
            G //= 2
    NP, GC = N // G, G * C

    g3 = g_nchw.reshape(NP, GC, HW)          # free, contiguous relabel
    x3 = x_nchw.reshape(NP, GC, HW)

    # --- fold eval-mode BatchNorm2d(1) + conv bias into a single column:
    #       sigmoid(s*(w.a + b) + t) = sigmoid((s*w).a + (s*b + t))
    bn_scale = params["gamma"] / jnp.sqrt(params["var"] + eps)             # (1,)
    bn_shift = params["beta"] - params["mean"] * bn_scale                  # (1,)
    w_eff = (params["w_conv"] * bn_scale).astype(jnp.float32)              # (C,)
    shift = (params["b_conv"] * bn_scale + bn_shift).astype(jnp.float32)   # (1,)
    pvec = jnp.concatenate([w_eff, shift]).reshape(C + 1, 1)

    # --- generation-aware block sizing (64 MiB VMEM on v7x, 128 MiB on v5e/v6e).
    try:
        vmem_cap = int(pltpu.get_tpu_info().vmem_capacity_bytes)
    except Exception:
        vmem_cap = 64 * 1024 * 1024                 # conservative (v7x-sized)
    vmem_limit = (vmem_cap * 4) // 5                # ~51 MiB v7x, ~102 MiB v5e/v6e
    # 3 streamed operands x 2 pipeline buffers + ~6-8 live f32 temporaries in the
    # GELU chain  =>  budget ~1/16 of the limit per operand block (f32-equiv).
    block_budget = max(vmem_limit // 16, 1 << 20)
    px_budget = max(128, (block_budget // (GC * 4) // 128) * 128)

    # Lane-aligned HW tile; ragged last tile is masked by Pallas (cdiv grid).
    if HW <= 128:
        hw_tile = HW
    else:
        hw_tile = min(px_budget, (HW // 128) * 128)
    nb = min(NP, max(1, px_budget // hw_tile))

    # Keep at least 2 grid blocks so both v7x TensorCores get work.
    while _cdiv(NP, nb) * _cdiv(HW, hw_tile) < 2:
        if nb > 1:
            nb = _cdiv(nb, 2)
        elif hw_tile > 128:
            hw_tile = max(128, ((hw_tile // 2) // 128) * 128)
        else:
            break

    grid = (_cdiv(NP, nb), _cdiv(HW, hw_tile))
    data_spec = pl.BlockSpec((nb, GC, hw_tile), lambda b, h: (b, 0, h))

    out = pl.pallas_call(
        _make_kernel(C, G),
        out_shape=jax.ShapeDtypeStruct((NP, GC, HW), dtype),
        grid_spec=pltpu.PrefetchScalarGridSpec(
            num_scalar_prefetch=0,
            grid=grid,
            in_specs=[
                data_spec,                                        # g
                data_spec,                                        # x
                pl.BlockSpec((C + 1, 1), lambda b, h: (0, 0)),    # packed params
            ],
            out_specs=data_spec,                                  # out
        ),
        compiler_params=pltpu.CompilerParams(
            dimension_semantics=("parallel", "parallel"),
            vmem_limit_bytes=int(vmem_limit),
        ),
    )(g3, x3, pvec)
    return out.reshape(N, C, H, W)


def init_params(key, f_int):
    """Deterministic synthetic parameters matching spAttention_block(.., F_int, ..)."""
    keys = jax.random.split(key, 6)
    w_conv = jax.random.normal(keys[0], (f_int,), jnp.float32) / jnp.sqrt(float(f_int))
    b_conv = 0.1 * jax.random.normal(keys[1], (1,), jnp.float32)
    gamma = jax.random.uniform(keys[2], (1,), jnp.float32, 0.5, 1.5)
    beta = 0.1 * jax.random.normal(keys[3], (1,), jnp.float32)
    mean = 0.1 * jax.random.normal(keys[4], (1,), jnp.float32)
    var = jax.random.uniform(keys[5], (1,), jnp.float32, 0.5, 1.5)
    return dict(w_conv=w_conv, b_conv=b_conv, gamma=gamma, beta=beta, mean=mean, var=var)


def spattention_reference(g, x, params, *, eps=1e-5):
    """Pure-JAX reference with identical math (exact GELU, eval-mode BN)."""
    f = (g + x).astype(jnp.float32)
    a = jax.nn.gelu(f, approximate=False)
    conv = jnp.einsum("nchw,c->nhw", a, params["w_conv"]) + params["b_conv"][0]
    bn_scale = params["gamma"][0] / jnp.sqrt(params["var"][0] + eps)
    bn = (conv - params["mean"][0]) * bn_scale + params["beta"][0]
    psi = jax.nn.sigmoid(bn)[:, None, :, :]
    return (x.astype(jnp.float32) * psi).astype(x.dtype)


def _check(key, n, c, h, w):
    kg, kx, kp = jax.random.split(key, 3)
    g = jax.random.normal(kg, (n, c, h, w), jnp.float32)
    x = jax.random.normal(kx, (n, c, h, w), jnp.float32)
    params = init_params(kp, c)
    out = jax.block_until_ready(spattention_forward(g, x, params))
    ref = spattention_reference(g, x, params)
    assert out.shape == (n, c, h, w), out.shape
    assert jnp.allclose(out, ref, atol=1e-4, rtol=1e-4), \
        float(jnp.max(jnp.abs(out - ref)))


if __name__ == "__main__":
    key = jax.random.PRNGKey(0)
    k1, k2 = jax.random.split(key, 2)

    # Primary small shape (batch=2, F_int=4, 16x16) — sublane-packed path.
    _check(k1, 2, 4, 16, 16)
    # Non-power-of-two spatial size (14x14) — exercises the ragged cdiv tile.
    _check(k2, 2, 4, 14, 14)

    print("KERNEL_OK")
</pallas_src>

<mosaic_0001>
module attributes {stable_mosaic.version = 11 : i64} {
  func.func @kernel(%arg0: i32, %arg1: i32, %arg2: memref<1x8x128xf32, #tpu.memory_space<vmem>>, %arg3: memref<1x8x128xf32, #tpu.memory_space<vmem>>, %arg4: memref<5x1xf32, #tpu.memory_space<vmem>>, %arg5: memref<1x8x128xf32, #tpu.memory_space<vmem>>) attributes {dimension_semantics = [#tpu.dimension_semantics<parallel>, #tpu.dimension_semantics<parallel>], iteration_bounds = array<i64: 1, 2>, scalar_prefetch = 0 : i64, scratch_operands = 0 : i64, tpu.core_type = #tpu.core_type<tc>, window_params = [{transform_indices = @transform_0, window_bounds = array<i64: 1, 8, 128>}, {transform_indices = @transform_1, window_bounds = array<i64: 1, 8, 128>}, {pipeline_mode = #tpu.pipeline_mode<synchronous>, transform_indices = @transform_2, window_bounds = array<i64: 5, 1>}, {transform_indices = @transform_3, window_bounds = array<i64: 1, 8, 128>}]} {
    %c0 = arith.constant 0 : index
    %c0_0 = arith.constant 0 : index
    %c0_1 = arith.constant 0 : index
    %0 = vector.load %arg3[%c0, %c0_0, %c0_1] : memref<1x8x128xf32, #tpu.memory_space<vmem>>, vector<1x8x128xf32>
    %c0_2 = arith.constant 0 : index
    %c0_3 = arith.constant 0 : index
    %c0_4 = arith.constant 0 : index
    %1 = vector.load %arg2[%c0_2, %c0_3, %c0_4] : memref<1x8x128xf32, #tpu.memory_space<vmem>>, vector<1x8x128xf32>
    %2 = arith.addf %1, %0 : vector<1x8x128xf32>
    %3 = math.absf %2 : vector<1x8x128xf32>
    %cst = arith.constant 0.707106769 : f32
    %4 = vector.broadcast %cst : f32 to vector<1x8x128xf32>
    %5 = arith.mulf %3, %4 : vector<1x8x128xf32>
    %cst_5 = arith.constant 0.327591091 : f32
    %6 = vector.broadcast %cst_5 : f32 to vector<1x8x128xf32>
    %7 = arith.mulf %6, %5 : vector<1x8x128xf32>
    %cst_6 = arith.constant 1.000000e+00 : f32
    %8 = vector.broadcast %cst_6 : f32 to vector<1x8x128xf32>
    %9 = arith.addf %8, %7 : vector<1x8x128xf32>
    %10 = tpu.reciprocal %9 {approx = true} : vector<1x8x128xf32> -> vector<1x8x128xf32>
    %11 = arith.mulf %9, %10 : vector<1x8x128xf32>
    %cst_7 = arith.constant 2.000000e+00 : f32
    %12 = vector.broadcast %cst_7 : f32 to vector<1x8x128xf32>
    %13 = arith.subf %12, %11 : vector<1x8x128xf32>
    %14 = arith.mulf %10, %13 : vector<1x8x128xf32>
    %cst_8 = arith.constant 1.06140542 : f32
    %15 = vector.broadcast %cst_8 : f32 to vector<1x8x128xf32>
    %16 = arith.mulf %14, %15 : vector<1x8x128xf32>
    %cst_9 = arith.constant -1.45315206 : f32
    %17 = vector.broadcast %cst_9 : f32 to vector<1x8x128xf32>
    %18 = arith.addf %17, %16 : vector<1x8x128xf32>
    %19 = arith.mulf %14, %18 : vector<1x8x128xf32>
    %cst_10 = arith.constant 1.42141378 : f32
    %20 = vector.broadcast %cst_10 : f32 to vector<1x8x128xf32>
    %21 = arith.addf %20, %19 : vector<1x8x128xf32>
    %22 = arith.mulf %14, %21 : vector<1x8x128xf32>
    %cst_11 = arith.constant -0.284496725 : f32
    %23 = vector.broadcast %cst_11 : f32 to vector<1x8x128xf32>
    %24 = arith.addf %23, %22 : vector<1x8x128xf32>
    %25 = arith.mulf %14, %24 : vector<1x8x128xf32>
    %cst_12 = arith.constant 0.254829586 : f32
    %26 = vector.broadcast %cst_12 : f32 to vector<1x8x128xf32>
    %27 = arith.addf %26, %25 : vector<1x8x128xf32>
    %28 = arith.mulf %14, %27 : vector<1x8x128xf32>
    %29 = arith.mulf %5, %5 : vector<1x8x128xf32>
    %cst_13 = arith.constant 0.000000e+00 : f32
    %30 = vector.broadcast %cst_13 : f32 to vector<1x8x128xf32>
    %31 = arith.subf %30, %29 : vector<1x8x128xf32>
    %32 = math.exp %31 : vector<1x8x128xf32>
    %33 = arith.mulf %28, %32 : vector<1x8x128xf32>
    %cst_14 = arith.constant 1.000000e+00 : f32
    %34 = vector.broadcast %cst_14 : f32 to vector<1x8x128xf32>
    %35 = arith.subf %34, %33 : vector<1x8x128xf32>
    %36 = arith.mulf %3, %35 : vector<1x8x128xf32>
    %37 = arith.addf %2, %36 : vector<1x8x128xf32>
    %cst_15 = arith.constant 5.000000e-01 : f32
    %38 = vector.broadcast %cst_15 : f32 to vector<1x8x128xf32>
    %39 = arith.mulf %38, %37 : vector<1x8x128xf32>
    %c0_16 = arith.constant 0 : index
    %c0_17 = arith.constant 0 : index
    %40 = vector.load %arg4[%c0_16, %c0_17] : memref<5x1xf32, #tpu.memory_space<vmem>>, vector<4x1xf32>
    %c4 = arith.constant 4 : index
    %c0_18 = arith.constant 0 : index
    %41 = vector.load %arg4[%c4, %c0_18] : memref<5x1xf32, #tpu.memory_space<vmem>>, vector<1x1xf32>
    %42 = vector.extract_strided_slice %39 {offsets = [0, 0, 0], sizes = [1, 4, 128], strides = [1, 1, 1]} : vector<1x8x128xf32> to vector<1x4x128xf32>
    %43 = vector.shape_cast %40 : vector<4x1xf32> to vector<1x4x1xf32>
    %44 = vector.broadcast %43 : vector<1x4x1xf32> to vector<1x4x128xf32>
    %45 = arith.mulf %42, %44 : vector<1x4x128xf32>
    %cst_19 = arith.constant dense<0.000000e+00> : vector<1x128xf32>
    %46 = vector.multi_reduction <add>, %45, %cst_19 [1] : vector<1x4x128xf32> to vector<1x128xf32>
    %47 = vector.shape_cast %46 : vector<1x128xf32> to vector<1x1x128xf32>
    %48 = vector.shape_cast %41 : vector<1x1xf32> to vector<1x1x1xf32>
    %49 = vector.broadcast %48 : vector<1x1x1xf32> to vector<1x1x128xf32>
    %50 = arith.addf %47, %49 : vector<1x1x128xf32>
    %cst_20 = arith.constant -6.000000e+01 : f32
    %51 = vector.broadcast %cst_20 : f32 to vector<1x1x128xf32>
    %52 = arith.maximumf %50, %51 : vector<1x1x128xf32>
    %cst_21 = arith.constant 0.000000e+00 : f32
    %53 = vector.broadcast %cst_21 : f32 to vector<1x1x128xf32>
    %54 = arith.subf %53, %52 : vector<1x1x128xf32>
    %55 = math.exp %54 : vector<1x1x128xf32>
    %cst_22 = arith.constant 1.000000e+00 : f32
    %56 = vector.broadcast %cst_22 : f32 to vector<1x1x128xf32>
    %57 = arith.addf %56, %55 : vector<1x1x128xf32>
    %58 = tpu.reciprocal %57 {approx = true} : vector<1x1x128xf32> -> vector<1x1x128xf32>
    %59 = arith.mulf %57, %58 : vector<1x1x128xf32>
    %cst_23 = arith.constant 2.000000e+00 : f32
    %60 = vector.broadcast %cst_23 : f32 to vector<1x1x128xf32>
    %61 = arith.subf %60, %59 : vector<1x1x128xf32>
    %62 = arith.mulf %58, %61 : vector<1x1x128xf32>
    %63 = vector.extract_strided_slice %0 {offsets = [0, 0, 0], sizes = [1, 4, 128], strides = [1, 1, 1]} : vector<1x8x128xf32> to vector<1x4x128xf32>
    %64 = vector.broadcast %62 : vector<1x1x128xf32> to vector<1x4x128xf32>
    %65 = arith.mulf %63, %64 : vector<1x4x128xf32>
    %c0_24 = arith.constant 0 : index
    %c0_25 = arith.constant 0 : index
    %c0_26 = arith.constant 0 : index
    %66 = vector.load %arg5[%c0_24, %c0_25, %c0_26] : memref<1x8x128xf32, #tpu.memory_space<vmem>>, vector<1x4x128xf32>
    tpu.vector_store %arg5[%c0_24, %c0_25, %c0_26], %65 {strides = array<i32>} : memref<1x8x128xf32, #tpu.memory_space<vmem>>, vector<1x4x128xf32>,
    %67 = vector.extract_strided_slice %39 {offsets = [0, 4, 0], sizes = [1, 4, 128], strides = [1, 1, 1]} : vector<1x8x128xf32> to vector<1x4x128xf32>
    %68 = vector.shape_cast %40 : vector<4x1xf32> to vector<1x4x1xf32>
    %69 = vector.broadcast %68 : vector<1x4x1xf32> to vector<1x4x128xf32>
    %70 = arith.mulf %67, %69 : vector<1x4x128xf32>
    %cst_27 = arith.constant dense<0.000000e+00> : vector<1x128xf32>
    %71 = vector.multi_reduction <add>, %70, %cst_27 [1] : vector<1x4x128xf32> to vector<1x128xf32>
    %72 = vector.shape_cast %71 : vector<1x128xf32> to vector<1x1x128xf32>
    %73 = vector.shape_cast %41 : vector<1x1xf32> to vector<1x1x1xf32>
    %74 = vector.broadcast %73 : vector<1x1x1xf32> to vector<1x1x128xf32>
    %75 = arith.addf %72, %74 : vector<1x1x128xf32>
    %cst_28 = arith.constant -6.000000e+01 : f32
    %76 = vector.broadcast %cst_28 : f32 to vector<1x1x128xf32>
    %77 = arith.maximumf %75, %76 : vector<1x1x128xf32>
    %cst_29 = arith.constant 0.000000e+00 : f32
    %78 = vector.broadcast %cst_29 : f32 to vector<1x1x128xf32>
    %79 = arith.subf %78, %77 : vector<1x1x128xf32>
    %80 = math.exp %79 : vector<1x1x128xf32>
    %cst_30 = arith.constant 1.000000e+00 : f32
    %81 = vector.broadcast %cst_30 : f32 to vector<1x1x128xf32>
    %82 = arith.addf %81, %80 : vector<1x1x128xf32>
    %83 = tpu.reciprocal %82 {approx = true} : vector<1x1x128xf32> -> vector<1x1x128xf32>
    %84 = arith.mulf %82, %83 : vector<1x1x128xf32>
    %cst_31 = arith.constant 2.000000e+00 : f32
    %85 = vector.broadcast %cst_31 : f32 to vector<1x1x128xf32>
    %86 = arith.subf %85, %84 : vector<1x1x128xf32>
    %87 = arith.mulf %83, %86 : vector<1x1x128xf32>
    %88 = vector.extract_strided_slice %0 {offsets = [0, 4, 0], sizes = [1, 4, 128], strides = [1, 1, 1]} : vector<1x8x128xf32> to vector<1x4x128xf32>
    %89 = vector.broadcast %87 : vector<1x1x128xf32> to vector<1x4x128xf32>
    %90 = arith.mulf %88, %89 : vector<1x4x128xf32>
    %c0_32 = arith.constant 0 : index
    %c4_33 = arith.constant 4 : index
    %c0_34 = arith.constant 0 : index
    %91 = vector.load %arg5[%c0_32, %c4_33, %c0_34] : memref<1x8x128xf32, #tpu.memory_space<vmem>>, vector<1x4x128xf32>
    tpu.vector_store %arg5[%c0_32, %c4_33, %c0_34], %90 {strides = array<i32>} : memref<1x8x128xf32, #tpu.memory_space<vmem>>, vector<1x4x128xf32>,
    return
  }
  func.func @transform_0(%arg0: i32, %arg1: i32) -> (i32, i32, i32) {
    %c0_i32 = arith.constant 0 : i32
    %c0_i32_0 = arith.constant 0 : i32
    return %arg0, %c0_i32, %arg1 : i32, i32, i32
  }
  func.func @transform_1(%arg0: i32, %arg1: i32) -> (i32, i32, i32) {
    %c0_i32 = arith.constant 0 : i32
    %c0_i32_0 = arith.constant 0 : i32
    return %arg0, %c0_i32, %arg1 : i32, i32, i32
  }
  func.func @transform_2(%arg0: i32, %arg1: i32) -> (i32, i32) {
    %c0_i32 = arith.constant 0 : i32
    %c0_i32_0 = arith.constant 0 : i32
    %c0_i32_1 = arith.constant 0 : i32
    return %c0_i32, %c0_i32_0 : i32, i32
  }
  func.func @transform_3(%arg0: i32, %arg1: i32) -> (i32, i32, i32) {
    %c0_i32 = arith.constant 0 : i32
    %c0_i32_0 = arith.constant 0 : i32
    return %arg0, %c0_i32, %arg1 : i32, i32, i32
  }
}

</mosaic_0001>

<bundles_post_ra>
// kernel: tpu_custom_call.1
= control target key start
LH: loop header
LB: loop body
LE: loop exit
PB: predicated region body
PF: predicated region fallthrough
CT: control target
= control target key end

     0   :  { %8 = vsyncpa [#allocation3], 0  ;;  %s968_s0 = inlined_call_operand.hbm [shape: f32[1,8,256], index: 0, kind: input, shape index: {}]   ;;  %s969_s1 = inlined_call_operand.hbm [shape: f32[1,8,256], index: 1, kind: input, shape index: {}]   ;;  %s970_s2 = inlined_call_operand.vmem [shape: f32[5,1], index: 2, kind: input, shape index: {}]   ;;  %s971_s3 = inlined_call_operand.hbm [shape: f32[1,8,256], index: 3, kind: output, shape index: {}]  }
   0x1   :  { %10 = vsyncpa [#allocation3 + $0x1], 0 }
   0x2   :  { %11 = vsyncpa [#allocation6], 0 }
   0x3   :  { %13 = vsyncpa [#allocation6 + $0x1], 0 }
   0x4   :  { %14 = vsyncpa [#allocation4], 0 }
   0x5   :  { %16 = vsyncpa [#allocation4 + $0x1], 0  ;;  %s732_s12 = smov 0   ;;  %s734_s13 = smov 0  }
   0x6   :  { %s736_s14 = smov 0   ;;  %s738_s15 = smov 0  }
   0x7   :  { %s740_s16 = smov 0   ;;  %s742_s17 = smov 0  }
   0x8 LB: > { %s463_s18 = sadd.s32 4294967295, %s706_s17   ;;  %s464_s19 = sadd.s32 4294967294, %s706_s17   ;;  %s706_s17 = sphi %s742_s17, %s22_s17   ;;  %s702_s16 = sphi %s740_s16, %s991_s16   ;;  %s698_s15 = sphi %s738_s15, %s990_s15   ;;  %s694_s14 = sphi %s736_s14, %s989_s14   ;;  %s690_s13 = sphi %s734_s13, %s988_s13   ;;  %s686_s12 = sphi %s732_s12, %s987_s12  }
   0x9   : > { %s31_s20 = sadd.s32 1, %s702_s16  ;;  %s43_s21 = sadd.s32 1, %s694_s14 }
   0xa   : > { %p32_p0 = scmp.ge.s32.totalorder %s31_s20, 2  ;;  %p50_p1 = scmp.ne.s32.totalorder %s694_s14, %s690_s13 }
   0xb   : > { %p51_p2 = scmp.eq.s32.totalorder %s706_s17, 0  ;;  %p56_p3 = scmp.ne.s32.totalorder %s690_s13, %s686_s12 }
   0xc   : > { %s993_s20 = smov (%p32_p0, %s31_s20), 0  ;;  %p57_p5 = scmp.eq.s32.totalorder %s463_s18, 0 }
   0xd   : > { %p773_p4 = por %p51_p2, %p50_p1  ;;  %s39_s23 = ssub.s32 %s702_s16, %s993_s20 }
   0xe   : > { %p131_p6 = scmp.eq.s32.totalorder %s463_s18, 1  ;;  %p41_p7 = scmp.eq.s32.totalorder %s39_s23, 0 }
   0xf   : > { %p779_p8 = por %p57_p5, %p56_p3  ;;  %p137_p10 = scmp.eq.s32.totalorder %s464_s19, 1 }
  0x10   : > { %p783_p9 = por %p131_p6, %p50_p1  ;;  %p496_p13 = scmp.lt.s32.totalorder %s706_s17, 2 }
  0x11   : > { %s975_s24 = scalar_select %p779_p8, 1, 0 }
  0x12   : > { %s976_s25 = scalar_select %p783_p9, 1, 0 }
  0x13   : > { %s788_s26 = scalar_select %p41_p7, %s694_s14, %s43_s21  }
  0x14   : > { %p790_p11 = por %p137_p10, %p56_p3  ;;  %s797_s28 = sand.u32 1, %s694_s14  }
  0x15   : > { %s467_s29 = sshll.u32 %s797_s28, 3  ;;  %s468_s30 = sshll.u32 %s702_s16, 7 }
  0x16   : > { %s977_s27 = scalar_select %p790_p11, 1, 0 }
  0x17   : > { %s806_s6 = scalar_lea.hbm %s968_s0, %s468_s30  ;;  %s164_s7 = scalar_lea.vmem [#allocation2], %s467_s29 }
  0x18   : > { %s173_s8 = sshll.u32 %s164_s7, 4  ;;  %p814_p0 = pnand %p496_p13, %p773_p4  ;;  %s810_s8 = int_to_ptr.vmem [resolvable:$true] %s173_s8 }
  0x19   : > { %s161_s10 = scalar_lea.sflag [#allocation3], %s797_s28  ;;  %s560_s11 = scalar_lea.hbm %s806_s6, 128 }
  0x1a   : > { %p561_p3 = scmp.ne.s32.totalorder %s806_s6, %s560_s11  ;;  %p562_p5 = pneg %p814_p0 }
  0x1b   : > { %s565_s21 = scalar_lea.hbm %s968_s0, 256  ;;  %p566_p4 = scmp.lt.u32.totalorder %s806_s6, %s968_s0 }
  0x1c   : > { %p563_p6 = pnand %p562_p5, %p561_p3  ;;  %p567_p10 = scmp.lt.u32.totalorder %s565_s21, %s560_s11 }
  0x1d   : > { %p569_p12 = scmp.lt.u32.totalorder %s560_s11, %s806_s6 }
  0x1e   : > { %p564_p7 = pneg %p563_p6  ;;  %p568_p13 = por %p567_p10, %p566_p4 }
  0x20   : > { %p570_p1 = por %p569_p12, %p568_p13 }
  0x22   : > { %p571_p2 = pnand %p570_p1, %p564_p7 }
  0x24   : > { %574 = shalt.err (!%p571_p2)
}
  0x25   : > { %s575_s4 = scalar_lea.vmem %s810_s8, 128  ;;  %s708_s5 = smov [#allocation2]  }
  0x26   : > { %p576_p3 = scmp.ne.s32.totalorder %s810_s8, %s575_s4  ;;  %s580_s7 = sshll.u32 %s708_s5, 4  ;;  %s581_s7 = int_to_ptr.vmem [resolvable:$false] %s580_s7 }
  0x27   : > { %s582_s18 = scalar_lea.vmem %s581_s7, 256  ;;  %p583_p9 = scmp.lt.s32.totalorder %s810_s8, %s581_s7 }
  0x28   : > { %p578_p6 = pnand %p576_p3, %p562_p5  ;;  %p584_p4 = scmp.lt.s32.totalorder %s582_s18, %s575_s4 }
  0x2a   : > { %p579_p11 = pneg %p578_p6  ;;  %p585_p10 = por %p584_p4, %p583_p9 }
  0x2c   : > { %p586_p12 = pnand %p585_p10, %p579_p11 }
  0x2e   : > { %589 = shalt.err (!%p586_p12)
}
  0x2f   : > { %488 = dma.hbm_to_vmem [thread:$0]  (!%p814_p0), %s806_s6, 128, %s810_s8, %s161_s10  }
  0x30   : > { %p979_p1 = scmp.lt.s32.totalorder %s706_s17, 3  ;;  %p980_p2 = scmp.ge.s32.totalorder %s706_s17, 1 }
  0x31   : > { %s859_s22 = scalar_lea.hbm %s969_s1, %s468_s30  ;;  %s184_s23 = scalar_lea.vmem [#allocation5], %s467_s29 }
  0x32   : > { %p850_p7 = pnand %p980_p2, %p979_p1  ;;  %s193_s4 = sshll.u32 %s184_s23, 4  ;;  %s194_s4 = int_to_ptr.vmem [resolvable:$true] %s193_s4 }
  0x33   : > { %s181_s6 = scalar_lea.sflag [#allocation6], %s797_s28  ;;  %s590_s8 = scalar_lea.hbm %s859_s22, 128 }
  0x34   : > { %s981_s11 = scalar_select %p850_p7, 1, 0 }
  0x35   : > { %p591_p9 = scmp.ne.s32.totalorder %s859_s22, %s590_s8  ;;  %s595_s30 = scalar_lea.hbm %s969_s1, 256 }
  0x36   : > { %p596_p3 = scmp.lt.u32.totalorder %s859_s22, %s969_s1  ;;  %p597_p6 = scmp.lt.u32.totalorder %s595_s30, %s590_s8 }
  0x37   : > { %p593_p11 = pnand %p591_p9, %p562_p5  ;;  %p599_p10 = scmp.lt.u32.totalorder %s590_s8, %s859_s22 }
  0x38   : > { %p598_p4 = por %p597_p6, %p596_p3 }
  0x39   : > { %p594_p13 = pneg %p593_p11 }
  0x3a   : > { %p600_p12 = por %p599_p10, %p598_p4 }
  0x3c   : > { %p601_p1 = pnand %p600_p12, %p594_p13 }
  0x3e   : > { %604 = shalt.err (!%p601_p1)
}
  0x3f   : > { %s605_s28 = scalar_lea.vmem %s194_s4, 128  ;;  %s709_s29 = smov [#allocation5]  }
  0x40   : > { %p606_p2 = scmp.ne.s32.totalorder %s194_s4, %s605_s28  ;;  %s610_s19 = sshll.u32 %s709_s29, 4  ;;  %s611_s19 = int_to_ptr.vmem [resolvable:$false] %s610_s19 }
  0x41   : > { %s612_s21 = scalar_lea.vmem %s611_s19, 256  ;;  %p613_p8 = scmp.lt.s32.totalorder %s194_s4, %s611_s19 }
  0x42   : > { %p608_p9 = pnand %p606_p2, %p562_p5  ;;  %p614_p7 = scmp.lt.s32.totalorder %s612_s21, %s605_s28 }
  0x44   : > { %p609_p11 = pneg %p608_p9  ;;  %p615_p3 = por %p614_p7, %p613_p8 }
  0x46   : > { %p616_p6 = pnand %p615_p3, %p609_p11 }
  0x48   : > { %619 = shalt.err (!%p616_p6)
}
  0x49   : > { %491 = dma.hbm_to_vmem [thread:$0]  (!%p814_p0), %s859_s22, 128, %s194_s4, %s181_s6  }
  0x4a   : > { %p982_p13 = scmp.ne.s32.totalorder %s981_s11, 0 }
  0x4b   : > { %s886_s23 = sand.u32 (!%p982_p13), 1, %s690_s13   ;;  %p983_p8 = scmp.ne.s32.totalorder (!%p982_p13), %s975_s24, 0 }
  0x4c   : > { %202 = sbr.rel (%p982_p13) target bundleno = 291 (0x123), region = 32  ;;  %s889_s8 = sshll.u32 (!%p982_p13), %s886_s23, 3 }
  0x4d   : > { %s205_s10 = scalar_lea.sflag (!%p982_p13), [#allocation3], %s886_s23  ;;  %s208_s5 = scalar_lea.vmem (!%p982_p13), [#allocation2], %s889_s8 }
  0x53   : > { %673 = dma.done.wait (%p983_p8), %s205_s10, 128  }
  0x54   : > { %675 = vsyncadd (%p983_p8), %s205_s10, 4294967168  ;;  %s214_s9 = scalar_lea.sflag [#allocation6], %s886_s23  ;;  %s217_s11 = scalar_lea.vmem [#allocation5], %s889_s8 }
  0x55   : > { %677 = dma.done.wait (%p983_p8), %s214_s9, 128  }
  0x56   : > { %679 = vsyncadd (%p983_p8), %s214_s9, 4294967168  ;;  %v710_v0 = vmov 0   ;;  %v274_v1 = vld [vmem:[%s970_s2] sm:$0xf]  ;;  %v275_v2 = vld [vmem:[%s970_s2 + $0x4] sm:$0x1] }
  0x57   : > { %547 = vset.pattern.permute.xlu0 %v710_v0  ;;  %v909_v3 = vld [vmem:[%s217_s11] sm:$0xff]  ;;  %v246_v4 = vld [vmem:[%s208_s5] sm:$0xff]  ;;  %vm282_vm0 = vcmask 1043456   ;;  %v305_v0 = vlaneseq  ;;  %s476_s24 = sshll.u32 %s698_s15, 7  ;;  %s244_s7 = scalar_lea.vmem [#allocation7], %s889_s8 }
  0x58   : > { %278 = vperm.xlu0 %547, %v274_v1   ;;  %v247_v5 = vadd.f32 %v246_v4, %v909_v3  ;;  %s356_s18 = sshll.u32 %s244_s7, 4  ;;  %s919_s19 = scalar_lea.hbm %s971_s3, %s476_s24  ;;  %s921_s18 = int_to_ptr.vmem [resolvable:$true] %s356_s18 }
  0x59   : > { %v306_v1 = vshrl.u32 %v305_v0, 7  ;;  %s341_s21 = scalar_lea.sflag [#allocation4], %s886_s23  ;;  %s620_s10 = scalar_lea.vmem %s921_s18, 128 }
  0x5a   : > { %v248_v6 = vand.u32 2147483647, %v247_v5  ;;  %p621_p0 = scmp.ne.s32.totalorder %s921_s18, %s620_s10  ;;  %p984_p5 = scmp.ne.s32.totalorder %s976_s25, 0 }
  0x5b   : > { %s711_s15 = smov [#allocation7]  }
  0x5c   : > { %292 = vperm.xlu0 %547, %v275_v2   ;;  %v249_v7 = vmul.f32 0.70710677, %v248_v6  ;;  %p622_p7 = pnand %p621_p0, %p984_p5  ;;  %s624_s8 = sshll.u32 %s711_s15, 4  ;;  %s625_s8 = int_to_ptr.vmem [resolvable:$false] %s624_s8 }
  0x5d   : > { %s626_s5 = scalar_lea.vmem %s625_s8, 256  ;;  %p627_p10 = scmp.lt.s32.totalorder %s921_s18, %s625_s8 }
  0x5e   : > { %v250_v8 = vmul.f32 0.3275911, %v249_v7  ;;  %v265_v17 = vmul.f32 %v249_v7, %v249_v7  ;;  %p623_p4 = pneg %p622_p7  ;;  %p628_p12 = scmp.lt.s32.totalorder %s626_s5, %s620_s10 }
  0x60   : > { %v251_v9 = vadd.f32 1.0, %v250_v8  ;;  %v266_v19 = vsub.f32 0.0, %v265_v17  ;;  %p629_p1 = por %p628_p12, %p627_p10 }
  0x62   : > { %548 = vrcp.f32 %v251_v9  ;;  %v267_v21 = vmul.f32 1.442695, %v266_v19  ;;  %p630_p2 = pnand %p629_p1, %p623_p4 }
  0x64   : > { %550 = vpow2.f32 %v267_v21 }
  0x6c   : > { %v549_v10 = vpop.eup %548 }
  0x6d   : > { %v253_v11 = vmul.f32 %v549_v10, %v251_v9 }
  0x6e   : > { %v551_v26 = vpop.eup %550 }
  0x6f   : > { %v254_v12 = vsub.f32 2.0, %v253_v11 }
  0x71   : > { %v255_v13 = vmul.f32 %v549_v10, %v254_v12 }
  0x73   : > { %v256_v14 = vmul.f32 1.0614054, %v255_v13 }
  0x75   : > { %v257_v15 = vadd.f32 -1.4531521, %v256_v14 }
  0x77   : > { %v258_v16 = vmul.f32 %v257_v15, %v255_v13 }
  0x79   : > { %v259_v18 = vadd.f32 1.4214138, %v258_v16 }
  0x7b   : > { %v260_v20 = vmul.f32 %v259_v18, %v255_v13 }
  0x7d   : > { %v261_v22 = vadd.f32 -0.28449672, %v260_v20 }
  0x7f   : > { %v262_v23 = vmul.f32 %v261_v22, %v255_v13 }
  0x81   : > { %v263_v24 = vadd.f32 0.2548296, %v262_v23 }
  0x83   : > { %v264_v25 = vmul.f32 %v263_v24, %v255_v13 }
  0x85   : > { %v269_v27 = vmul.f32 %v551_v26, %v264_v25 }
  0x87   : > { %v270_v28 = vsub.f32 1.0, %v269_v27 }
  0x89   : > { %v271_v29 = vmul.f32 %v270_v28, %v248_v6 }
  0x8b   : > { %v272_v30 = vadd.f32 %v271_v29, %v247_v5  ;;  %v307_v5 = vsub.s32 0, %v306_v1 }
  0x8d   : > { %v273_v31 = vmul.f32 0.5, %v272_v30 }
  0xd7   : > { %v279_v32 = vpop.permute.xlu0 %278 }
  0xd8   : > { %v281_v33 = vmul.f32 %v279_v32, %v273_v31  ;;  %v311_v34 = vrot.slane %v279_v32, 4 }
  0xda   : > { %v283_v35 = vsel %vm282_vm0, %v281_v33, 0.0  ;;  %v313_v36 = vmul.f32 %v311_v34, %v273_v31 }
  0xdb   : > { %v284_v37 = vrot.slane %v283_v35, 4  ;;  %v293_v49 = vpop.permute.xlu0 %292 }
  0xdc   : > { %v315_v38 = vrot.slane %v313_v36, 4 }
  0xdd   : > { %v285_v39 = vadd.f32 %v284_v37, %v283_v35 }
  0xde   : > { %v317_v40 = vsel %vm282_vm0, %v315_v38, 0.0 }
  0xdf   : > { %v318_v41 = vrot.slane %v317_v40, 4  ;;  %v286_v42 = vrot.slane %v285_v39, 2 }
  0xe1   : > { %v287_v43 = vadd.f32 %v286_v42, %v285_v39  ;;  %v319_v44 = vadd.f32 %v318_v41, %v317_v40 }
  0xe3   : > { %v288_v45 = vrot.slane %v287_v43, 1  ;;  %v320_v46 = vrot.slane %v319_v44, 2 }
  0xe5   : > { %v289_v47 = vadd.f32 %v288_v45, %v287_v43  ;;  %v321_v48 = vadd.f32 %v320_v46, %v319_v44 }
  0xe7   : > { %v295_v50 = vadd.f32 %v293_v49, %v289_v47  ;;  %v322_v51 = vrot.slane %v321_v48, 1 }
  0xe9   : > { %v296_v52 = vmax.f32 %v295_v50, -60.0  ;;  %v323_v53 = vadd.f32 %v322_v51, %v321_v48 }
  0xeb   : > { %v297_v54 = vsub.f32 0.0, %v296_v52  ;;  %v324_v55 = vadd.f32 %v323_v53, %v293_v49 }
  0xed   : > { %v298_v56 = vmul.f32 1.442695, %v297_v54  ;;  %v325_v57 = vmax.f32 %v324_v55, -60.0 }
  0xef   : > { %552 = vpow2.f32 %v298_v56  ;;  %v326_v58 = vsub.f32 0.0, %v325_v57 }
  0xf1   : > { %v327_v59 = vmul.f32 1.442695, %v326_v58 }
  0xf3   : > { %554 = vpow2.f32 %v327_v59 }
  0xf9   : > { %v553_v60 = vpop.eup %552 }
  0xfa   : > { %v300_v61 = vadd.f32 1.0, %v553_v60 }
  0xfc   : > { %556 = vrcp.f32 %v300_v61 }
  0xfd   : > { %v555_v62 = vpop.eup %554 }
  0xfe   : > { %v329_v63 = vadd.f32 1.0, %v555_v62 }
 0x100   : > { %558 = vrcp.f32 %v329_v63 }
 0x106   : > { %v557_v2 = vpop.eup %556 }
 0x107   : > { %v302_v4 = vmul.f32 %v557_v2, %v300_v61 }
 0x109   : > { %v303_v6 = vsub.f32 2.0, %v302_v4 }
 0x10a   : > { %v559_v7 = vpop.eup %558 }
 0x10b   : > { %v304_v8 = vmul.f32 %v557_v2, %v303_v6  ;;  %v331_v9 = vmul.f32 %v559_v7, %v329_v63 }
 0x10d   : > { %v308_v10 = vrot.slane %v304_v8, %v307_v5  ;;  %v332_v11 = vsub.f32 2.0, %v331_v9 }
 0x10f   : > { %v333_v12 = vmul.f32 %v559_v7, %v332_v11  ;;  %v309_v13 = vmul.f32 %v308_v10, %v909_v3 }
 0x111   : > { %v337_v14 = vrot.slane %v333_v12, %v307_v5  ;;  %310 = vst [vmem:[%s244_s7] sm:$0xf] %v309_v13 }
 0x113   : > { %v338_v15 = vmul.f32 %v337_v14, %v909_v3 }
 0x115   : > { %339 = vst [vmem:[%s244_s7] sm:$0xf0] %v338_v15 }
 0x116   : > { %633 = shalt.err (!%p630_p2)
}
 0x117   : > { %s634_s23 = scalar_lea.hbm %s919_s19, 128  ;;  %s638_s22 = scalar_lea.hbm %s971_s3, 256 }
 0x118   : > { %p635_p9 = scmp.ne.s32.totalorder %s919_s19, %s634_s23  ;;  %p639_p6 = scmp.lt.u32.totalorder %s919_s19, %s971_s3 }
 0x119   : > { %p640_p13 = scmp.lt.u32.totalorder %s638_s22, %s634_s23  ;;  %p642_p0 = scmp.lt.u32.totalorder %s634_s23, %s919_s19 }
 0x11a   : > { %p636_p11 = pnand %p635_p9, %p984_p5 }
 0x11b   : > { %p641_p8 = por %p640_p13, %p639_p6 }
 0x11c   : > { %p637_p3 = pneg %p636_p11 }
 0x11d   : > { %p643_p7 = por %p642_p0, %p641_p8 }
 0x11f   : > { %p644_p4 = pnand %p643_p7, %p637_p3 }
 0x121   : > { %647 = shalt.err (!%p644_p4)
}
 0x122   : > { %483 = dma.vmem_to_hbm [thread:$0]  (%p984_p5), %s921_s18, 128, %s919_s19, %s341_s21  }
 0x123 PF: > { %s368_s30 = sand.u32 1, %s686_s12   ;;  %p985_p10 = scmp.ne.s32.totalorder %s977_s27, 0 }
 0x124   : > { %p986_p12 = scmp.ge.s32.totalorder %s706_s17, 2  ;;  %s369_s24 = scalar_lea.sflag [#allocation4], %s368_s30 }
 0x126   : > { %p493_p1 = pnand %p986_p12, %p985_p10 }
 0x128   : > { %681 = dma.done.wait (!%p493_p1), %s369_s24, 128  }
 0x129   : > { %683 = vsyncadd (!%p493_p1), %s369_s24, 4294967168  ;;  %s22_s17 = sadd.s32 1, %s706_s17   ;;  %s987_s12 = smov %s690_s13 }
 0x12a   : > { %p19_p2 = scmp.ge.s32.totalorder %s22_s17, 4   ;;  %s988_s13 = smov %s694_s14 }
 0x12b   : > { %s989_s14 = smov %s788_s26  ;;  %s990_s15 = smov %s702_s16 }
 0x12c   : > { %s991_s16 = smov %s993_s20  ;;  %21 = sbr.rel (!%p19_p2) target bundleno = 8 (0x8), region = 90 }
 0x133   :  { %374 = vsyncpa [#allocation3], 1 }
 0x134   :  { %376 = vsyncpa [#allocation3 + $0x1], 1 }
 0x135   :  { %377 = vsyncpa [#allocation6], 1 }
 0x136   :  { %379 = vsyncpa [#allocation6 + $0x1], 1 }
 0x137   :  { %380 = vsyncpa [#allocation4], 1 }
 0x138   :  { %382 = vsyncpa [#allocation4 + $0x1], 1 }

</bundles_post_ra>
